<compile_context>
chip_gen: v6e
topology: v6e:2x2x1
jax: 0.10.0
libtpu: 0.0.40
codegen_flags: <defaults>
</compile_context>

<pallas_src>
import functools

import jax
import jax.numpy as jnp
from jax.experimental import pallas as pl
from jax.experimental.pallas import tpu as pltpu

_LANE = 128          # lane granule (last dim)
_SUBLANE_BF16 = 16   # bf16 packs 16 rows per vreg
_TILE_B_CAP = 1024   # batch rows per grid step (VMEM-safe on v5e/v6e/v7x)


def _round_up(x, m):
    return (x + m - 1) // m * m


def _fcnet_fused_kernel(*refs):
    """refs = (x_ref, w0, b0, w1, b1, ..., wL, bL, o_ref).

    x_ref : (TILE_B, D0_pad)     f32 (cast to bf16 on-chip)
    w_i   : (D_i, D_{i+1})       bf16, (in, out) layout, zero-padded to 128 lanes
    b_i   : (1, D_{i+1})         f32, zero-padded
    o_ref : (TILE_B, D_last)     f32
    Every layer (including the last) applies ReLU, matching FCNet.forward.
    """
    x_ref = refs[0]
    o_ref = refs[-1]
    wb = refs[1:-1]
    n_layers = len(wb) // 2

    # bf16 cast happens on-chip (VPU) instead of as an extra HBM pass.
    h = x_ref[...].astype(jnp.bfloat16)
    for i in range(n_layers):                    # static unroll, layer count is static
        w_ref = wb[2 * i]
        b_ref = wb[2 * i + 1]
        y = jnp.dot(h, w_ref[...], preferred_element_type=jnp.float32)   # MXU
        y = jnp.maximum(y + b_ref[...], 0.0)                             # VPU, f32
        if i + 1 < n_layers:
            h = y.astype(jnp.bfloat16)           # back to bf16 for the next MXU pass
        else:
            o_ref[...] = y.astype(o_ref.dtype)


def init_fcnet_params(key, image_size, channels, num_layers, layer_size, classes):
    """PyTorch-style uniform init.

    Returns:
      params_pad : list of (w_pad bf16 (in_pad, out_pad), b_pad f32 (1, out_pad))
                   for the kernel (weights pre-transposed to (in, out), padded
                   with zeros to 128-lane granules).
      params_f32 : list of (w f32 (in, out), b f32 (out,)) — exact torch math,
                   used only as the f32 reference.
    """
    assert image_size > 1 and channels >= 1 and num_layers > 1
    assert layer_size > 1 and classes > 1
    dims = [image_size ** 2 * channels] + [layer_size] * num_layers + [classes]
    dims_pad = [_round_up(d, _LANE) for d in dims]
    params_pad, params_f32 = [], []
    for i in range(len(dims) - 1):
        fan_in, fan_out = dims[i], dims[i + 1]
        key, kw, kb = jax.random.split(key, 3)
        bound = 1.0 / float(fan_in) ** 0.5
        w = jax.random.uniform(kw, (fan_in, fan_out), jnp.float32, -bound, bound)
        b = jax.random.uniform(kb, (fan_out,), jnp.float32, -bound, bound)
        params_f32.append((w, b))
        w_pad = jnp.zeros((dims_pad[i], dims_pad[i + 1]), jnp.bfloat16)
        w_pad = w_pad.at[:fan_in, :fan_out].set(w.astype(jnp.bfloat16))
        b_pad = jnp.zeros((1, dims_pad[i + 1]), jnp.float32)
        b_pad = b_pad.at[0, :fan_out].set(b)
        params_pad.append((w_pad, b_pad))
    return params_pad, params_f32


@functools.partial(jax.jit, static_argnames=("classes",))
def fcnet_forward(x_nchw, params_pad, *, classes):
    # Flatten exactly like torch: x.view(N, -1) on NCHW.
    B = x_nchw.shape[0]
    x = x_nchw.reshape(B, -1)
    d0 = x.shape[1]
    d0_pad = params_pad[0][0].shape[0]
    d_out = params_pad[-1][0].shape[1]

    # Feature axis pad only if the flattened width isn't lane-aligned
    # (no-op here: 16*16*4 = 1024). Batch axis is never padded in HBM —
    # ragged tails are handled by the cdiv grid + masked output stores.
    if d0 != d0_pad:
        x = jnp.pad(x, ((0, 0), (0, d0_pad - d0)))

    # Small batches: one full-extent block. Large batches: 1024-row tiles
    # (multiple of 16 -> full bf16 sublane packing, lane-dense stores).
    tile_b = min(_TILE_B_CAP, B)
    grid_b = pl.cdiv(B, tile_b)

    flat_args = [x]
    in_specs = [pl.BlockSpec((tile_b, d0_pad), lambda i: (i, 0))]
    for w, b in params_pad:
        flat_args += [w, b]
        # Constant index_maps -> weights/biases stay VMEM-resident across steps.
        in_specs += [
            pl.BlockSpec(w.shape, lambda i: (0, 0)),
            pl.BlockSpec(b.shape, lambda i: (0, 0)),
        ]

    out = pl.pallas_call(
        _fcnet_fused_kernel,
        out_shape=jax.ShapeDtypeStruct((B, d_out), jnp.float32),
        grid=(grid_b,),
        in_specs=in_specs,
        out_specs=pl.BlockSpec((tile_b, d_out), lambda i: (i, 0)),
        compiler_params=pltpu.CompilerParams(
            dimension_semantics=("parallel",),       # shards batch grid across v7x's 2 TCs
            vmem_limit_bytes=32 << 20,
        ),
    )(*flat_args)

    # Drop lane padding; padded output lanes are exact zeros by construction.
    return out[:, :classes]


def fcnet_reference_bf16(x_nchw, params_pad, classes):
    """Plain-JAX mirror of the kernel's math (bf16 matmuls, f32 accumulate)."""
    B = x_nchw.shape[0]
    x = x_nchw.reshape(B, -1)
    d0_pad = params_pad[0][0].shape[0]
    if x.shape[1] != d0_pad:
        x = jnp.pad(x, ((0, 0), (0, d0_pad - x.shape[1])))
    h = x.astype(jnp.bfloat16)
    n = len(params_pad)
    for i, (w, b) in enumerate(params_pad):
        y = jnp.maximum(jnp.dot(h, w, preferred_element_type=jnp.float32) + b, 0.0)
        h = y.astype(jnp.bfloat16) if i + 1 < n else y
    return h[:, :classes]


def fcnet_reference_f32(x_nchw, params_f32):
    """True f32 torch-equivalent math (no bf16, no padding)."""
    B = x_nchw.shape[0]
    h = x_nchw.reshape(B, -1)
    for w, b in params_f32:
        h = jnp.maximum(h @ w + b, 0.0)
    return h


if __name__ == "__main__":
    # Small config consistent with the module's constructor.
    image_size = 16
    channels = 4
    num_layers = 3
    layer_size = 32
    classes = 10
    batch = 2

    key = jax.random.PRNGKey(0)
    key, kx = jax.random.split(key)
    x = jax.random.normal(kx, (batch, channels, image_size, image_size), jnp.float32)

    params_pad, params_f32 = init_fcnet_params(
        key, image_size, channels, num_layers, layer_size, classes)

    out = jax.block_until_ready(fcnet_forward(x, params_pad, classes=classes))

    ref_bf16 = fcnet_reference_bf16(x, params_pad, classes)
    ref_f32 = fcnet_reference_f32(x, params_f32)

    assert out.shape == (batch, classes), out.shape
    assert jnp.allclose(out, ref_bf16, atol=2e-3, rtol=2e-3), "mismatch vs bf16 mirror"
    # bf16 weights/activations vs true f32 torch math: allow ~quantization error.
    assert jnp.allclose(out, ref_f32, atol=1e-1, rtol=1e-1), "mismatch vs f32 reference"

    print("KERNEL_OK")
</pallas_src>

<mosaic_0001>
module attributes {stable_mosaic.version = 11 : i64} {
  func.func @_fcnet_fused_kernel(%arg0: i32, %arg1: memref<2x1024xf32, #tpu.memory_space<vmem>>, %arg2: memref<1024x128xbf16, #tpu.memory_space<vmem>>, %arg3: memref<1x128xf32, #tpu.memory_space<vmem>>, %arg4: memref<128x128xbf16, #tpu.memory_space<vmem>>, %arg5: memref<1x128xf32, #tpu.memory_space<vmem>>, %arg6: memref<128x128xbf16, #tpu.memory_space<vmem>>, %arg7: memref<1x128xf32, #tpu.memory_space<vmem>>, %arg8: memref<128x128xbf16, #tpu.memory_space<vmem>>, %arg9: memref<1x128xf32, #tpu.memory_space<vmem>>, %arg10: memref<2x128xf32, #tpu.memory_space<vmem>>) attributes {dimension_semantics = [#tpu.dimension_semantics<parallel>], iteration_bounds = array<i64: 1>, scalar_prefetch = 0 : i64, scratch_operands = 0 : i64, tpu.core_type = #tpu.core_type<tc>, window_params = [{transform_indices = @transform_0, window_bounds = array<i64: 2, 1024>}, {pipeline_mode = #tpu.pipeline_mode<synchronous>, transform_indices = @transform_1, window_bounds = array<i64: 1024, 128>}, {pipeline_mode = #tpu.pipeline_mode<synchronous>, transform_indices = @transform_2, window_bounds = array<i64: 1, 128>}, {pipeline_mode = #tpu.pipeline_mode<synchronous>, transform_indices = @transform_3, window_bounds = array<i64: 128, 128>}, {pipeline_mode = #tpu.pipeline_mode<synchronous>, transform_indices = @transform_4, window_bounds = array<i64: 1, 128>}, {pipeline_mode = #tpu.pipeline_mode<synchronous>, transform_indices = @transform_5, window_bounds = array<i64: 128, 128>}, {pipeline_mode = #tpu.pipeline_mode<synchronous>, transform_indices = @transform_6, window_bounds = array<i64: 1, 128>}, {pipeline_mode = #tpu.pipeline_mode<synchronous>, transform_indices = @transform_7, window_bounds = array<i64: 128, 128>}, {pipeline_mode = #tpu.pipeline_mode<synchronous>, transform_indices = @transform_8, window_bounds = array<i64: 1, 128>}, {transform_indices = @transform_9, window_bounds = array<i64: 2, 128>}]} {
    %c0 = arith.constant 0 : index
    %c0_0 = arith.constant 0 : index
    %0 = vector.load %arg1[%c0, %c0_0] : memref<2x1024xf32, #tpu.memory_space<vmem>>, vector<2x1024xf32>
    %1 = arith.truncf %0 : vector<2x1024xf32> to vector<2x1024xbf16>
    %c0_1 = arith.constant 0 : index
    %c0_2 = arith.constant 0 : index
    %2 = vector.load %arg2[%c0_1, %c0_2] : memref<1024x128xbf16, #tpu.memory_space<vmem>>, vector<1024x128xbf16>
    %cst = arith.constant dense<0.000000e+00> : vector<2x128xf32>
    %3 = tpu.matmul %1, %2, %cst {dimension_numbers = #tpu.dot_dimension_numbers<[1], [0], [0], [1], [0, 0, 1, 1], [], []>} : vector<2x1024xbf16>, vector<1024x128xbf16>, vector<2x128xf32> -> vector<2x128xf32>
    %c0_3 = arith.constant 0 : index
    %c0_4 = arith.constant 0 : index
    %4 = vector.load %arg3[%c0_3, %c0_4] : memref<1x128xf32, #tpu.memory_space<vmem>>, vector<1x128xf32>
    %5 = vector.broadcast %4 : vector<1x128xf32> to vector<2x128xf32>
    %6 = arith.addf %3, %5 : vector<2x128xf32>
    %cst_5 = arith.constant 0.000000e+00 : f32
    %7 = vector.broadcast %cst_5 : f32 to vector<2x128xf32>
    %8 = arith.maximumf %6, %7 : vector<2x128xf32>
    %9 = arith.truncf %8 : vector<2x128xf32> to vector<2x128xbf16>
    %c0_6 = arith.constant 0 : index
    %c0_7 = arith.constant 0 : index
    %10 = vector.load %arg4[%c0_6, %c0_7] : memref<128x128xbf16, #tpu.memory_space<vmem>>, vector<128x128xbf16>
    %cst_8 = arith.constant dense<0.000000e+00> : vector<2x128xf32>
    %11 = tpu.matmul %9, %10, %cst_8 {dimension_numbers = #tpu.dot_dimension_numbers<[1], [0], [0], [1], [0, 0, 1, 1], [], []>} : vector<2x128xbf16>, vector<128x128xbf16>, vector<2x128xf32> -> vector<2x128xf32>
    %c0_9 = arith.constant 0 : index
    %c0_10 = arith.constant 0 : index
    %12 = vector.load %arg5[%c0_9, %c0_10] : memref<1x128xf32, #tpu.memory_space<vmem>>, vector<1x128xf32>
    %13 = vector.broadcast %12 : vector<1x128xf32> to vector<2x128xf32>
    %14 = arith.addf %11, %13 : vector<2x128xf32>
    %cst_11 = arith.constant 0.000000e+00 : f32
    %15 = vector.broadcast %cst_11 : f32 to vector<2x128xf32>
    %16 = arith.maximumf %14, %15 : vector<2x128xf32>
    %17 = arith.truncf %16 : vector<2x128xf32> to vector<2x128xbf16>
    %c0_12 = arith.constant 0 : index
    %c0_13 = arith.constant 0 : index
    %18 = vector.load %arg6[%c0_12, %c0_13] : memref<128x128xbf16, #tpu.memory_space<vmem>>, vector<128x128xbf16>
    %cst_14 = arith.constant dense<0.000000e+00> : vector<2x128xf32>
    %19 = tpu.matmul %17, %18, %cst_14 {dimension_numbers = #tpu.dot_dimension_numbers<[1], [0], [0], [1], [0, 0, 1, 1], [], []>} : vector<2x128xbf16>, vector<128x128xbf16>, vector<2x128xf32> -> vector<2x128xf32>
    %c0_15 = arith.constant 0 : index
    %c0_16 = arith.constant 0 : index
    %20 = vector.load %arg7[%c0_15, %c0_16] : memref<1x128xf32, #tpu.memory_space<vmem>>, vector<1x128xf32>
    %21 = vector.broadcast %20 : vector<1x128xf32> to vector<2x128xf32>
    %22 = arith.addf %19, %21 : vector<2x128xf32>
    %cst_17 = arith.constant 0.000000e+00 : f32
    %23 = vector.broadcast %cst_17 : f32 to vector<2x128xf32>
    %24 = arith.maximumf %22, %23 : vector<2x128xf32>
    %25 = arith.truncf %24 : vector<2x128xf32> to vector<2x128xbf16>
    %c0_18 = arith.constant 0 : index
    %c0_19 = arith.constant 0 : index
    %26 = vector.load %arg8[%c0_18, %c0_19] : memref<128x128xbf16, #tpu.memory_space<vmem>>, vector<128x128xbf16>
    %cst_20 = arith.constant dense<0.000000e+00> : vector<2x128xf32>
    %27 = tpu.matmul %25, %26, %cst_20 {dimension_numbers = #tpu.dot_dimension_numbers<[1], [0], [0], [1], [0, 0, 1, 1], [], []>} : vector<2x128xbf16>, vector<128x128xbf16>, vector<2x128xf32> -> vector<2x128xf32>
    %c0_21 = arith.constant 0 : index
    %c0_22 = arith.constant 0 : index
    %28 = vector.load %arg9[%c0_21, %c0_22] : memref<1x128xf32, #tpu.memory_space<vmem>>, vector<1x128xf32>
    %29 = vector.broadcast %28 : vector<1x128xf32> to vector<2x128xf32>
    %30 = arith.addf %27, %29 : vector<2x128xf32>
    %cst_23 = arith.constant 0.000000e+00 : f32
    %31 = vector.broadcast %cst_23 : f32 to vector<2x128xf32>
    %32 = arith.maximumf %30, %31 : vector<2x128xf32>
    %c0_24 = arith.constant 0 : index
    %c0_25 = arith.constant 0 : index
    %33 = vector.load %arg10[%c0_24, %c0_25] : memref<2x128xf32, #tpu.memory_space<vmem>>, vector<2x128xf32>
    tpu.vector_store %arg10[%c0_24, %c0_25], %32 {strides = array<i32>} : memref<2x128xf32, #tpu.memory_space<vmem>>, vector<2x128xf32>,
    return
  }
  func.func @transform_0(%arg0: i32) -> (i32, i32) {
    %c0_i32 = arith.constant 0 : i32
    %c0_i32_0 = arith.constant 0 : i32
    return %arg0, %c0_i32 : i32, i32
  }
  func.func @transform_1(%arg0: i32) -> (i32, i32) {
    %c0_i32 = arith.constant 0 : i32
    %c0_i32_0 = arith.constant 0 : i32
    %c0_i32_1 = arith.constant 0 : i32
    return %c0_i32, %c0_i32_0 : i32, i32
  }
  func.func @transform_2(%arg0: i32) -> (i32, i32) {
    %c0_i32 = arith.constant 0 : i32
    %c0_i32_0 = arith.constant 0 : i32
    %c0_i32_1 = arith.constant 0 : i32
    return %c0_i32, %c0_i32_0 : i32, i32
  }
  func.func @transform_3(%arg0: i32) -> (i32, i32) {
    %c0_i32 = arith.constant 0 : i32
    %c0_i32_0 = arith.constant 0 : i32
    %c0_i32_1 = arith.constant 0 : i32
    return %c0_i32, %c0_i32_0 : i32, i32
  }
  func.func @transform_4(%arg0: i32) -> (i32, i32) {
    %c0_i32 = arith.constant 0 : i32
    %c0_i32_0 = arith.constant 0 : i32
    %c0_i32_1 = arith.constant 0 : i32
    return %c0_i32, %c0_i32_0 : i32, i32
  }
  func.func @transform_5(%arg0: i32) -> (i32, i32) {
    %c0_i32 = arith.constant 0 : i32
    %c0_i32_0 = arith.constant 0 : i32
    %c0_i32_1 = arith.constant 0 : i32
    return %c0_i32, %c0_i32_0 : i32, i32
  }
  func.func @transform_6(%arg0: i32) -> (i32, i32) {
    %c0_i32 = arith.constant 0 : i32
    %c0_i32_0 = arith.constant 0 : i32
    %c0_i32_1 = arith.constant 0 : i32
    return %c0_i32, %c0_i32_0 : i32, i32
  }
  func.func @transform_7(%arg0: i32) -> (i32, i32) {
    %c0_i32 = arith.constant 0 : i32
    %c0_i32_0 = arith.constant 0 : i32
    %c0_i32_1 = arith.constant 0 : i32
    return %c0_i32, %c0_i32_0 : i32, i32
  }
  func.func @transform_8(%arg0: i32) -> (i32, i32) {
    %c0_i32 = arith.constant 0 : i32
    %c0_i32_0 = arith.constant 0 : i32
    %c0_i32_1 = arith.constant 0 : i32
    return %c0_i32, %c0_i32_0 : i32, i32
  }
  func.func @transform_9(%arg0: i32) -> (i32, i32) {
    %c0_i32 = arith.constant 0 : i32
    %c0_i32_0 = arith.constant 0 : i32
    return %arg0, %c0_i32 : i32, i32
  }
}

</mosaic_0001>

<bundles_post_ra>
// kernel: fcnet_forward.1
= control target key start
LH: loop header
LB: loop body
LE: loop exit
PB: predicated region body
PF: predicated region fallthrough
CT: control target
= control target key end

     0   :  { %14 = vsyncpa [#allocation3], 0  ;;  %s1752_s0 = inlined_call_operand.vmem [shape: f32[2,1024], index: 0, kind: input, shape index: {}]   ;;  %s1753_s1 = inlined_call_operand.hbm [shape: bf16[1024,128], index: 1, kind: input, shape index: {}]   ;;  %s1754_s2 = inlined_call_operand.vmem [shape: f32[1,128], index: 2, kind: input, shape index: {}]   ;;  %s1755_s3 = inlined_call_operand.vmem [shape: bf16[128,128], index: 3, kind: input, shape index: {}]   ;;  %s1756_s4 = inlined_call_operand.vmem [shape: f32[1,128], index: 4, kind: input, shape index: {}]   ;;  %s1757_s5 = inlined_call_operand.vmem [shape: bf16[128,128], index: 5, kind: input, shape index: {}]   ;;  %s1758_s6 = inlined_call_operand.vmem [shape: f32[1,128], index: 6, kind: input, shape index: {}]   ;;  %s1759_s7 = inlined_call_operand.hbm [shape: bf16[128,128], index: 7, kind: input, shape index: {}]   ;;  %s1760_s8 = inlined_call_operand.vmem [shape: f32[1,128], index: 8, kind: input, shape index: {}]   ;;  %s1761_s9 = inlined_call_operand.hbm [shape: f32[2,128], index: 9, kind: output, shape index: {}]  }
   0x1   :  { %15 = vsyncpa [#allocation6], 0 }
   0x2   :  { %16 = vsyncpa [#allocation4], 0  ;;  %s1583_s30 = smov [#allocation2]  }
   0x3   :  { %s24_s10 = sshll.u32 %s1583_s30, 4  ;;  %s25_s10 = int_to_ptr.vmem [resolvable:$true] %s24_s10 }
   0x4   :  { %s1525_s11 = scalar_lea.vmem %s25_s10, 8192  ;;  %p1530_p1 = scmp.lt.s32.totalorder %s25_s10, %s25_s10 }
   0x5   :  { %p1526_p0 = scmp.ne.s32.totalorder %s25_s10, %s1525_s11  ;;  %p1531_p2 = scmp.lt.s32.totalorder %s1525_s11, %s1525_s11 }
   0x7   :  { %p1532_p3 = por %p1531_p2, %p1530_p1 }
   0x9   :  { %p1533_p4 = pnand %p1532_p3, %p1526_p0 }
   0xb   :  { %1536 = shalt.err (!%p1533_p4)
}
   0xc   :  { %s1584_s12 = smov 64   ;;  %s1585_s13 = smov 4  }
   0xd   :  { %30 = dma.hbm_to_vmem [thread:$0]  %s1753_s1, 8192, %s25_s10, [#allocation3], %s1584_s12, %s1584_s12, %s1585_s13  }
   0xe   :  { %s1586_s16 = smov [#allocation5]  }
   0xf   :  { %s46_s17 = sshll.u32 %s1586_s16, 4  ;;  %s47_s17 = int_to_ptr.vmem [resolvable:$true] %s46_s17 }
  0x10   :  { %s1545_s18 = scalar_lea.vmem %s47_s17, 1024  ;;  %p1550_p6 = scmp.lt.s32.totalorder %s47_s17, %s47_s17 }
  0x11   :  { %p1546_p5 = scmp.ne.s32.totalorder %s47_s17, %s1545_s18  ;;  %p1551_p7 = scmp.lt.s32.totalorder %s1545_s18, %s1545_s18 }
  0x13   :  { %p1552_p8 = por %p1551_p7, %p1550_p6 }
  0x15   :  { %p1553_p9 = pnand %p1552_p8, %p1546_p5 }
  0x17   :  { %1556 = shalt.err (!%p1553_p9)
}
  0x18   :  { %52 = dma.hbm_to_vmem [thread:$0]  %s1759_s7, 1024, %s47_s17, [#allocation6], %s1584_s12, %s1584_s12, %s1585_s13  }
  0x19   :  { %1577 = dma.done.wait [#allocation3], 8192  }
  0x1a   :  { %1578 = vsyncadd [#allocation3], 4294959104 }
  0x1b   :  { %1579 = dma.done.wait [#allocation6], 1024  }
  0x1c   :  { %1580 = vsyncadd [#allocation6], 4294966272  ;;  %v1427_v0 = vld [vmem:[#allocation2 + $0x78] sm:$0xff]   ;;  %v1431_v4 = vld [vmem:[#allocation2 + $0x70] sm:$0xff]   ;;  %v1587_v22 = vmov 1983009808   ;;  %v70_v24 = vlaneseq }
  0x1d   :  { %v1428_v1 = vld [vmem:[#allocation2 + $0xf8] sm:$0xff]   ;;  %1244 = vmatprep.subr.bf16.mxu0 %v1427_v0  ;;  %v1432_v5 = vld [vmem:[#allocation2 + $0xf0] sm:$0xff]   ;;  %v1435_v8 = vld [vmem:[#allocation2 + $0x68] sm:$0xff]   ;;  %v68_v23 = vunpack.c.l.s4 %v1587_v22  ;;  %vm1589_vm0 = vmmov 0   ;;  %s1590_s13 = smov [#allocation7]  }
  0x1e   :  { %v1429_v2 = vld [vmem:[#allocation2 + $0x38] sm:$0xff]   ;;  %1266 = vmatprep.subr.bf16.mxu1 %v1428_v1  ;;  %v1433_v6 = vld [vmem:[#allocation2 + $0x30] sm:$0xff]   ;;  %v1436_v9 = vld [vmem:[#allocation2 + $0xe8] sm:$0xff]   ;;  %v71_v30 = vshrl.u32 %v70_v24, 7  ;;  %s1142_s14 = sshll.u32 %s1590_s13, 4  ;;  %s1143_s14 = int_to_ptr.vmem [resolvable:$true] %s1142_s14 }
  0x1f   :  { %v1430_v3 = vld [vmem:[#allocation2 + $0xb8] sm:$0xff]   ;;  %1245 = vmatpush3.bf16.msra.mxu0 %v1429_v2  ;;  %v1434_v7 = vld [vmem:[#allocation2 + $0xb0] sm:$0xff]   ;;  %v1437_v10 = vld [vmem:[#allocation2 + $0x28] sm:$0xff]   ;;  %v69_v29 = vunpack.c.0.s8 %v68_v23  ;;  %p1562_p11 = scmp.lt.s32.totalorder %s1143_s14, %s1143_s14 }
  0x20   :  { %1267 = vmatpush3.bf16.msra.mxu1 %v1430_v3  ;;  %1246 = vmatprep.subr.bf16.mxu0 %v1431_v4  ;;  %v1438_v11 = vld [vmem:[#allocation2 + $0xa8] sm:$0xff]   ;;  %v1439_v12 = vld [vmem:[#allocation2 + $0x60] sm:$0xff]   ;;  %v1443_v16 = vld [vmem:[#allocation2 + $0x58] sm:$0xff]  }
  0x21   :  { %1268 = vmatprep.subr.bf16.mxu1 %v1432_v5  ;;  %v1440_v13 = vld [vmem:[#allocation2 + $0xe0] sm:$0xff]   ;;  %v1444_v17 = vld [vmem:[#allocation2 + $0xd8] sm:$0xff]   ;;  %v1447_v20 = vld [vmem:[#allocation2 + $0x50] sm:$0xff]   ;;  %v1647_v35 = vsub.s32 %v69_v29, %v71_v30 }
  0x22   :  { %v1441_v14 = vld [vmem:[#allocation2 + $0x20] sm:$0xff]   ;;  %v1445_v18 = vld [vmem:[#allocation2 + $0x18] sm:$0xff]   ;;  %v1448_v21 = vld [vmem:[#allocation2 + $0xd0] sm:$0xff]  }
  0x23   :  { %1247 = vmatpush3.bf16.msra.mxu0 %v1433_v6  ;;  %v1442_v15 = vld [vmem:[#allocation2 + $0xa0] sm:$0xff]   ;;  %v1446_v19 = vld [vmem:[#allocation2 + $0x98] sm:$0xff]   ;;  %v1449_v25 = vld [vmem:[#allocation2 + $0x10] sm:$0xff]  }
  0x24   :  { %1269 = vmatpush3.bf16.msra.mxu1 %v1434_v7  ;;  %1248 = vmatprep.subr.bf16.mxu0 %v1435_v8  ;;  %v1450_v26 = vld [vmem:[#allocation2 + $0x90] sm:$0xff]   ;;  %v1451_v27 = vld [vmem:[#allocation2 + $0x48] sm:$0xff]   ;;  %v1455_v33 = vld [vmem:[#allocation2 + $0x40] sm:$0xff]  }
  0x25   :  { %1270 = vmatprep.subr.bf16.mxu1 %v1436_v9  ;;  %v1452_v28 = vld [vmem:[#allocation2 + $0xc8] sm:$0xff]   ;;  %v1456_v34 = vld [vmem:[#allocation2 + $0xc0] sm:$0xff]   ;;  %v1460_v41 = vld [vmem:[#allocation2 + $0x178] sm:$0xff]  }
  0x26   :  { %v1453_v31 = vld [vmem:[#allocation2 + $0x8] sm:$0xff]   ;;  %v1457_v36 = vld [vmem:[#allocation2] sm:$0xff]   ;;  %v1461_v42 = vld [vmem:[#allocation2 + $0x1f8] sm:$0xff]  }
  0x27   :  { %1249 = vmatpush3.bf16.msra.mxu0 %v1437_v10  ;;  %v1454_v32 = vld [vmem:[#allocation2 + $0x88] sm:$0xff]   ;;  %v1458_v37 = vld [vmem:[#allocation2 + $0x80] sm:$0xff]   ;;  %v1462_v46 = vld [vmem:[#allocation2 + $0x138] sm:$0xff]  }
  0x28   :  { %1271 = vmatpush3.bf16.msra.mxu1 %v1438_v11  ;;  %1250 = vmatprep.subr.bf16.mxu0 %v1439_v12  ;;  %v62_v38 = vld [vmem:[%s1752_s0] sm:$0xff]  ;;  %v1463_v49 = vld [vmem:[#allocation2 + $0x1b8] sm:$0xff]   ;;  %v1464_v51 = vld [vmem:[#allocation2 + $0x170] sm:$0xff]  }
  0x29   :  { %1272 = vmatprep.subr.bf16.mxu1 %v1440_v13  ;;  %v73_v39 = vrot.slane %v62_v38, %v1647_v35  ;;  %v66_v40 = vcombine.high %v62_v38, %v62_v38  ;;  %v1465_v53 = vld [vmem:[#allocation2 + $0x1f0] sm:$0xff]   ;;  %v1468_v56 = vld [vmem:[#allocation2 + $0x168] sm:$0xff]   ;;  %v1472_v60 = vld [vmem:[#allocation2 + $0x160] sm:$0xff]  }
  0x2a   :  { %v1466_v54 = vld [vmem:[#allocation2 + $0x130] sm:$0xff]   ;;  %v1469_v57 = vld [vmem:[#allocation2 + $0x1e8] sm:$0xff]   ;;  %v1473_v61 = vld [vmem:[#allocation2 + $0x1e0] sm:$0xff]  }
  0x2b   :  { %1251 = vmatpush3.bf16.msra.mxu0 %v1441_v14  ;;  %v81_v43 = vcombine.high %v73_v39, %v73_v39  ;;  %v80_v44 = vrot.slane %v66_v40, %v1647_v35  ;;  %v108_v45 = vpack.c.bf16 %v73_v39, %v73_v39  ;;  %v1467_v55 = vld [vmem:[#allocation2 + $0x1b0] sm:$0xff]   ;;  %v1470_v58 = vld [vmem:[#allocation2 + $0x128] sm:$0xff]   ;;  %v1474_v62 = vld [vmem:[#allocation2 + $0x120] sm:$0xff]  }
  0x2c   :  { %1273 = vmatpush3.bf16.msra.mxu1 %v1442_v15  ;;  %1252 = vmatprep.subr.bf16.mxu0 %v1443_v16  ;;  %v1471_v59 = vld [vmem:[#allocation2 + $0x1a8] sm:$0xff]   ;;  %v1475_v63 = vld [vmem:[#allocation2 + $0x1a0] sm:$0xff]   ;;  %v1476_v0 = vld [vmem:[#allocation2 + $0x158] sm:$0xff]  }
  0x2d   :  { %1274 = vmatprep.subr.bf16.mxu1 %v1444_v17  ;;  %v109_v47 = vpack.c.bf16 %v81_v43, %v81_v43  ;;  %v82_v48 = vcombine.high %v80_v44, %v80_v44  ;;  %v110_v50 = vpack.c.bf16 %v80_v44, %v80_v44  ;;  %v1477_v1 = vld [vmem:[#allocation2 + $0x1d8] sm:$0xff]   ;;  %v1480_v4 = vld [vmem:[#allocation2 + $0x150] sm:$0xff]   ;;  %v1484_v8 = vld [vmem:[#allocation2 + $0x148] sm:$0xff]  }
  0x2e   :  { %v1478_v2 = vld [vmem:[#allocation2 + $0x118] sm:$0xff]   ;;  %v1481_v5 = vld [vmem:[#allocation2 + $0x1d0] sm:$0xff]   ;;  %v1485_v9 = vld [vmem:[#allocation2 + $0x1c8] sm:$0xff]  }
  0x2f   :  { %1253 = vmatpush3.bf16.msra.mxu0 %v1445_v18  ;;  %667 = vmatprep.mubr.bf16.mxu0 %v109_v47  ;;  %v111_v52 = vpack.c.bf16 %v82_v48, %v82_v48  ;;  %v1479_v3 = vld [vmem:[#allocation2 + $0x198] sm:$0xff]   ;;  %v1482_v6 = vld [vmem:[#allocation2 + $0x110] sm:$0xff]   ;;  %v1486_v10 = vld [vmem:[#allocation2 + $0x108] sm:$0xff]  }
  0x30   :  { %1275 = vmatpush3.bf16.msra.mxu1 %v1446_v19  ;;  %1254 = vmatprep.subr.bf16.mxu0 %v1447_v20  ;;  %v1483_v7 = vld [vmem:[#allocation2 + $0x190] sm:$0xff]   ;;  %v1487_v11 = vld [vmem:[#allocation2 + $0x188] sm:$0xff]   ;;  %v1488_v12 = vld [vmem:[#allocation2 + $0x140] sm:$0xff]  }
  0x31   :  { %1276 = vmatprep.subr.bf16.mxu1 %v1448_v21  ;;  %707 = vmatprep.mubr.bf16.mxu1 %v111_v52  ;;  %v1489_v13 = vld [vmem:[#allocation2 + $0x1c0] sm:$0xff]   ;;  %v63_v15 = vld [vmem:[%s1752_s0 + $0x8] sm:$0xff]  ;;  %v1505_v39 = vld [vmem:[%s1757_s5 + $0x18] sm:$0xff]  }
  0x32   :  { %v1490_v14 = vld [vmem:[#allocation2 + $0x100] sm:$0xff]   ;;  %v90_v17 = vrot.slane %v63_v15, %v1647_v35  ;;  %v83_v18 = vcombine.high %v63_v15, %v63_v15  ;;  %v1495_v29 = vld [vmem:[%s1755_s3 + $0x28] sm:$0xff]   ;;  %v1506_v40 = vld [vmem:[%s1757_s5 + $0x10] sm:$0xff]  }
  0x33   :  { %1255 = vmatpush3.bf16.msra.mxu0 %v1449_v25  ;;  %v1491_v16 = vld [vmem:[#allocation2 + $0x180] sm:$0xff]  }
  0x34   :  { %1277 = vmatpush3.bf16.msra.mxu1 %v1450_v26  ;;  %1256 = vmatprep.subr.bf16.mxu0 %v1451_v27  ;;  %v98_v19 = vcombine.high %v90_v17, %v90_v17  ;;  %v97_v20 = vrot.slane %v83_v18, %v1647_v35  ;;  %v112_v21 = vpack.c.bf16 %v90_v17, %v90_v17  ;;  %v1493_v26 = vld [vmem:[%s1755_s3 + $0x38] sm:$0xff]   ;;  %v1588_v27 = vmov 0.0   ;;  %v1496_v30 = vld [vmem:[%s1755_s3 + $0x20] sm:$0xff]  }
  0x35   :  { %1278 = vmatprep.subr.bf16.mxu1 %v1452_v28  ;;  %v1494_v28 = vld [vmem:[%s1755_s3 + $0x30] sm:$0xff]   ;;  %v1501_v35 = vld [vmem:[%s1757_s5 + $0x38] sm:$0xff]   ;;  %v1504_v38 = vld [vmem:[%s1757_s5 + $0x20] sm:$0xff]  }
  0x36   :  { %v113_v22 = vpack.c.bf16 %v98_v19, %v98_v19  ;;  %v99_v23 = vcombine.high %v97_v20, %v97_v20  ;;  %v114_v24 = vpack.c.bf16 %v97_v20, %v97_v20  ;;  %v1515_v20 = vld [vmem:[#allocation5 + $0x8] sm:$0xff]  }
  0x37   :  { %1257 = vmatpush3.bf16.msra.mxu0 %v1453_v31  ;;  %v1497_v31 = vld [vmem:[%s1755_s3 + $0x18] sm:$0xff]  }
  0x38   :  { %1279 = vmatpush3.bf16.msra.mxu1 %v1454_v32  ;;  %1258 = vmatprep.subr.bf16.mxu0 %v1455_v33  ;;  %v115_v25 = vpack.c.bf16 %v99_v23, %v99_v23  ;;  %v1498_v32 = vld [vmem:[%s1755_s3 + $0x10] sm:$0xff]   ;;  %v1499_v33 = vld [vmem:[%s1755_s3 + $0x8] sm:$0xff]  }
  0x39   :  { %1280 = vmatprep.subr.bf16.mxu1 %v1456_v34  ;;  %v1500_v34 = vld [vmem:[%s1755_s3] sm:$0xff]  }
  0x3b   :  { %1259 = vmatpush3.bf16.msra.mxu0 %v1457_v36  ;;  %v1502_v36 = vld [vmem:[%s1757_s5 + $0x30] sm:$0xff]  }
  0x3c   :  { %1281 = vmatpush3.bf16.msra.mxu1 %v1458_v37  ;;  %1288 = vmatprep.subr.bf16.mxu0 %v1460_v41  ;;  %v1503_v37 = vld [vmem:[%s1757_s5 + $0x28] sm:$0xff]  }
  0x3d   :  { %1310 = vmatprep.subr.bf16.mxu1 %v1461_v42 }
  0x3e   :  { %668 = vmatmul.mubr.bf16.vlgmr.msra.gmra.mxu0 %v108_v45 }
  0x3f   :  { %1289 = vmatpush3.bf16.msra.mxu0 %v1462_v46  ;;  %708 = vmatmul.mubr.bf16.vlgmr.msra.gmra.mxu1 %v110_v50  ;;  %v1152_v50 = vld [vmem:[%s1754_s2] ss:$0 sm:$0xff] }
  0x40   :  { %1290 = vmatprep.subr.bf16.mxu0 %v1464_v51  ;;  %1311 = vmatpush3.bf16.msra.mxu1 %v1463_v49 }
  0x41   :  { %1312 = vmatprep.subr.bf16.mxu1 %v1465_v53  ;;  %747 = vmatprep.mubr.bf16.mxu0 %v113_v22  ;;  %v1226_v22 = vld [vmem:[%s1758_s6] ss:$0 sm:$0xff]  ;;  %s1557_s6 = scalar_lea.vmem %s1143_s14, 32 }
  0x42   :  { %787 = vmatprep.mubr.bf16.mxu1 %v115_v25  ;;  %p1558_p10 = scmp.ne.s32.totalorder %s1143_s14, %s1557_s6  ;;  %p1563_p12 = scmp.lt.s32.totalorder %s1557_s6, %s1557_s6 }
  0x43   :  { %1291 = vmatpush3.bf16.msra.mxu0 %v1466_v54 }
  0x44   :  { %1292 = vmatprep.subr.bf16.mxu0 %v1468_v56  ;;  %1313 = vmatpush3.bf16.msra.mxu1 %v1467_v55  ;;  %p1564_p13 = por %p1563_p12, %p1562_p11 }
  0x45   :  { %1314 = vmatprep.subr.bf16.mxu1 %v1469_v57 }
  0x46   :  { %p1565_p0 = pnand %p1564_p13, %p1558_p10 }
  0x47   :  { %1293 = vmatpush3.bf16.msra.mxu0 %v1470_v58 }
  0x48   :  { %1294 = vmatprep.subr.bf16.mxu0 %v1472_v60  ;;  %1315 = vmatpush3.bf16.msra.mxu1 %v1471_v59 }
  0x49   :  { %1316 = vmatprep.subr.bf16.mxu1 %v1473_v61 }
  0x4b   :  { %1295 = vmatpush3.bf16.msra.mxu0 %v1474_v62 }
  0x4c   :  { %1296 = vmatprep.subr.bf16.mxu0 %v1476_v0  ;;  %1317 = vmatpush3.bf16.msra.mxu1 %v1475_v63 }
  0x4d   :  { %1318 = vmatprep.subr.bf16.mxu1 %v1477_v1 }
  0x4f   :  { %1297 = vmatpush3.bf16.msra.mxu0 %v1478_v2 }
  0x50   :  { %1298 = vmatprep.subr.bf16.mxu0 %v1480_v4  ;;  %1319 = vmatpush3.bf16.msra.mxu1 %v1479_v3  ;;  %v1507_v4 = vld [vmem:[%s1757_s5 + $0x8] sm:$0xff]  }
  0x51   :  { %1320 = vmatprep.subr.bf16.mxu1 %v1481_v5  ;;  %v1508_v5 = vld [vmem:[%s1757_s5] sm:$0xff]  }
  0x53   :  { %1299 = vmatpush3.bf16.msra.mxu0 %v1482_v6  ;;  %v1509_v6 = vld [vmem:[#allocation5 + $0x38] sm:$0xff]  }
  0x54   :  { %1300 = vmatprep.subr.bf16.mxu0 %v1484_v8  ;;  %1321 = vmatpush3.bf16.msra.mxu1 %v1483_v7  ;;  %v1510_v7 = vld [vmem:[#allocation5 + $0x30] sm:$0xff]   ;;  %v1511_v8 = vld [vmem:[#allocation5 + $0x28] sm:$0xff]  }
  0x55   :  { %1322 = vmatprep.subr.bf16.mxu1 %v1485_v9  ;;  %v1512_v9 = vld [vmem:[#allocation5 + $0x20] sm:$0xff]  }
  0x57   :  { %1301 = vmatpush3.bf16.msra.mxu0 %v1486_v10  ;;  %v1513_v10 = vld [vmem:[#allocation5 + $0x18] sm:$0xff]  }
  0x58   :  { %1302 = vmatprep.subr.bf16.mxu0 %v1488_v12  ;;  %1323 = vmatpush3.bf16.msra.mxu1 %v1487_v11  ;;  %v1514_v11 = vld [vmem:[#allocation5 + $0x10] sm:$0xff]   ;;  %v1217_v12 = vld [vmem:[%s1756_s4] ss:$0 sm:$0xff] }
  0x59   :  { %1324 = vmatprep.subr.bf16.mxu1 %v1489_v13 }
  0x5b   :  { %1303 = vmatpush3.bf16.msra.mxu0 %v1490_v14 }
  0x5c   :  { %1325 = vmatpush3.bf16.msra.mxu1 %v1491_v16  ;;  %1359 = vmatprep.subr.bf16.mxu0 %v1588_v27 }
  0x5d   :  { %1379 = vmatprep.subr.bf16.mxu1 %v1588_v27 }
  0x5e   :  { %748 = vmatmul.mubr.bf16.vlgmr.msra.gmra.mxu0 %v112_v21  ;;  %v1516_v21 = vld [vmem:[#allocation5] sm:$0xff]  }
  0x5f   :  { %788 = vmatmul.mubr.bf16.vlgmr.msra.gmra.mxu1 %v114_v24  ;;  %1360 = vmatpush3.bf16.msra.mxu0 %v1493_v26 }
  0x60   :  { %1361 = vmatprep.subr.bf16.mxu0 %v1588_v27  ;;  %1375 = vmatprep.mubr.msk.bf16.mxu0 %vm1589_vm0, %v1588_v27 }
  0x61   :  { %1395 = vmatprep.mubr.msk.bf16.mxu1 %vm1589_vm0, %v1588_v27  ;;  %1380 = vmatpush3.bf16.msra.mxu1 %v1501_v35 }
  0x62   :  { %1381 = vmatprep.subr.bf16.mxu1 %v1588_v27 }
  0x63   :  { %1362 = vmatpush3.bf16.msra.mxu0 %v1494_v28 }
  0x64   :  { %1363 = vmatprep.subr.bf16.mxu0 %v1588_v27 }
  0x65   :  { %1382 = vmatpush3.bf16.msra.mxu1 %v1502_v36 }
  0x66   :  { %1383 = vmatprep.subr.bf16.mxu1 %v1588_v27 }
  0x67   :  { %1364 = vmatpush3.bf16.msra.mxu0 %v1495_v29 }
  0x68   :  { %1365 = vmatprep.subr.bf16.mxu0 %v1588_v27 }
  0x69   :  { %1384 = vmatpush3.bf16.msra.mxu1 %v1503_v37 }
  0x6a   :  { %1385 = vmatprep.subr.bf16.mxu1 %v1588_v27 }
  0x6b   :  { %1366 = vmatpush3.bf16.msra.mxu0 %v1496_v30 }
  0x6c   :  { %1367 = vmatprep.subr.bf16.mxu0 %v1588_v27 }
  0x6d   :  { %1386 = vmatpush3.bf16.msra.mxu1 %v1504_v38 }
  0x6e   :  { %1387 = vmatprep.subr.bf16.mxu1 %v1588_v27 }
  0x6f   :  { %1368 = vmatpush3.bf16.msra.mxu0 %v1497_v31  ;;  %v1235_v31 = vld [vmem:[%s1760_s8] ss:$0 sm:$0xff] }
  0x70   :  { %1369 = vmatprep.subr.bf16.mxu0 %v1588_v27 }
  0x71   :  { %1388 = vmatpush3.bf16.msra.mxu1 %v1505_v39 }
  0x72   :  { %1389 = vmatprep.subr.bf16.mxu1 %v1588_v27 }
  0x73   :  { %1370 = vmatpush3.bf16.msra.mxu0 %v1498_v32 }
  0x74   :  { %1371 = vmatprep.subr.bf16.mxu0 %v1588_v27 }
  0x75   :  { %1390 = vmatpush3.bf16.msra.mxu1 %v1506_v40 }
  0x76   :  { %1391 = vmatprep.subr.bf16.mxu1 %v1588_v27 }
  0x77   :  { %1372 = vmatpush3.bf16.msra.mxu0 %v1499_v33 }
  0x78   :  { %1373 = vmatprep.subr.bf16.mxu0 %v1588_v27 }
  0x79   :  { %1392 = vmatpush3.bf16.msra.mxu1 %v1507_v4 }
  0x7a   :  { %1393 = vmatprep.subr.bf16.mxu1 %v1588_v27 }
  0x7b   :  { %1374 = vmatpush3.bf16.msra.mxu0 %v1500_v34 }
  0x7c   :  { %1399 = vmatprep.subr.bf16.mxu0 %v1588_v27 }
  0x7d   :  { %1394 = vmatpush3.bf16.msra.mxu1 %v1508_v5 }
  0xfe   :  { %v1260_v41 = vpop.f32.mrf.mxu0 }
  0xff   :  { %v1282_v42 = vpop.f32.mrf.mxu1 }
 0x100   :  { %v1261_v43 = vpop.f32.mrf.mxu0 }
 0x101   :  { %v1283_v44 = vpop.f32.mrf.mxu1  ;;  %v1262_v49 = vadd.f32 %v1261_v43, %v1260_v41 }
 0x102   :  { %v1263_v45 = vpop.f32.mrf.mxu0  ;;  %v1284_v52 = vadd.f32 %v1283_v44, %v1282_v42 }
 0x103   :  { %v1285_v46 = vpop.f32.mrf.mxu1  ;;  %v670_v51 = vadd.f32 %v1262_v49, %v1152_v50 }
 0x104   :  { %v1264_v47 = vpop.f32.mrf.mxu0 }
 0x105   :  { %v1286_v48 = vpop.f32.mrf.mxu1  ;;  %v710_v56 = vadd.f32 %v1284_v52, %v670_v51 }
 0x11e   :  { %v1304_v53 = vpop.f32.mrf.mxu0 }
 0x11f   :  { %v1326_v54 = vpop.f32.mrf.mxu1 }
 0x120   :  { %v1305_v55 = vpop.f32.mrf.mxu0 }
 0x121   :  { %v1306_v57 = vadd.f32 %v1305_v55, %v1304_v53  ;;  %v1327_v58 = vpop.f32.mrf.mxu1 }
 0x122   :  { %v1307_v59 = vpop.f32.mrf.mxu0  ;;  %v1328_v61 = vadd.f32 %v1327_v58, %v1326_v54 }
 0x123   :  { %v750_v60 = vadd.f32 %v1306_v57, %v710_v56  ;;  %v1329_v62 = vpop.f32.mrf.mxu1 }
 0x124   :  { %v1308_v63 = vpop.f32.mrf.mxu0 }
 0x125   :  { %v790_v0 = vadd.f32 %v1328_v61, %v750_v60  ;;  %v1330_v1 = vpop.f32.mrf.mxu1 }
 0x127   :  { %v795_v2 = vmax.f32 %v790_v0, 0.0 }
 0x129   :  { %v796_v3 = vpack.c.bf16 %v795_v2, %v795_v2 }
 0x12b   :  { %1376 = vmatmul.mubr.bf16.vlgmr.msra.gmra.mxu0 %v796_v3 }
 0x12c   :  { %1415 = vmatprep.mubr.msk.bf16.mxu0 %vm1589_vm0, %v1588_v27  ;;  %1400 = vmatpush3.bf16.msra.mxu0 %v1509_v6 }
 0x12d   :  { %1401 = vmatprep.subr.bf16.mxu0 %v1588_v27 }
 0x130   :  { %1402 = vmatpush3.bf16.msra.mxu0 %v1510_v7 }
 0x131   :  { %1403 = vmatprep.subr.bf16.mxu0 %v1588_v27 }
 0x134   :  { %1404 = vmatpush3.bf16.msra.mxu0 %v1511_v8 }
 0x135   :  { %1405 = vmatprep.subr.bf16.mxu0 %v1588_v27 }
 0x138   :  { %1406 = vmatpush3.bf16.msra.mxu0 %v1512_v9 }
 0x139   :  { %1407 = vmatprep.subr.bf16.mxu0 %v1588_v27 }
 0x13c   :  { %1408 = vmatpush3.bf16.msra.mxu0 %v1513_v10 }
 0x13d   :  { %1409 = vmatprep.subr.bf16.mxu0 %v1588_v27 }
 0x140   :  { %1410 = vmatpush3.bf16.msra.mxu0 %v1514_v11 }
 0x141   :  { %1411 = vmatprep.subr.bf16.mxu0 %v1588_v27 }
 0x144   :  { %1412 = vmatpush3.bf16.msra.mxu0 %v1515_v20 }
 0x145   :  { %1413 = vmatprep.subr.bf16.mxu0 %v1588_v27 }
 0x148   :  { %1414 = vmatpush3.bf16.msra.mxu0 %v1516_v21 }
 0x1eb   :  { %v902_v13 = vpop.f32.mrf.mxu0 }
 0x1ec   :  { %v903_v14 = vadd.f32 %v1217_v12, %v902_v13 }
 0x1ed   :  { %v1377_v15 = vpop.f32.mrf.mxu0 }
 0x1ee   :  { %v908_v16 = vmax.f32 %v903_v14, 0.0 }
 0x1ef   :  { %v905_v17 = vpop.f32.mrf.mxu0 }
 0x1f0   :  { %v909_v18 = vpack.c.bf16 %v908_v16, %v908_v16 }
 0x1f1   :  { %v1378_v19 = vpop.f32.mrf.mxu0 }
 0x1f2   :  { %1396 = vmatmul.mubr.bf16.vlgmr.msra.gmra.mxu1 %v909_v18 }
 0x2b2   :  { %v1015_v23 = vpop.f32.mrf.mxu1 }
 0x2b3   :  { %v1016_v24 = vadd.f32 %v1226_v22, %v1015_v23 }
 0x2b4   :  { %v1397_v25 = vpop.f32.mrf.mxu1 }
 0x2b5   :  { %v1021_v26 = vmax.f32 %v1016_v24, 0.0 }
 0x2b6   :  { %v1018_v28 = vpop.f32.mrf.mxu1 }
 0x2b7   :  { %v1022_v29 = vpack.c.bf16 %v1021_v26, %v1021_v26 }
 0x2b8   :  { %v1398_v30 = vpop.f32.mrf.mxu1 }
 0x2b9   :  { %1416 = vmatmul.mubr.bf16.vlgmr.msra.gmra.mxu0 %v1022_v29 }
 0x379   :  { %v1128_v32 = vpop.f32.mrf.mxu0 }
 0x37a   :  { %v1129_v27 = vadd.f32 %v1235_v31, %v1128_v32 }
 0x37b   :  { %v1417_v33 = vpop.f32.mrf.mxu0 }
 0x37c   :  { %v1134_v34 = vmax.f32 %v1129_v27, 0.0 }
 0x37d   :  { %v1131_v35 = vpop.f32.mrf.mxu0 }
 0x37e   :  { %1135 = vst [vmem:[#allocation7] sm:$0x3] %v1134_v34 }
 0x37f   :  { %v1418_v36 = vpop.f32.mrf.mxu0 }
 0x380   :  { %1568 = shalt.err (!%p1565_p0)
}
 0x381   :  { %1145 = dma.vmem_to_hbm [thread:$0]  %s1143_s14, 32, %s1761_s9, [#allocation4]  }
 0x382   :  { %1581 = dma.done.wait [#allocation4], 32  }
 0x383   :  { %1582 = vsyncadd [#allocation4], 4294967264 }
 0x384   :  { %1149 = vsyncpa [#allocation3], 1 }
 0x385   :  { %1150 = vsyncpa [#allocation6], 1 }
 0x386   :  { %1151 = vsyncpa [#allocation4], 1 }

</bundles_post_ra>
